<compile_context>
chip_gen: v6e
topology: v6e:2x2x1
jax: 0.10.0
libtpu: 0.0.40
codegen_flags: <defaults>
</compile_context>

<pallas_src>
import numpy as np
import jax
import jax.numpy as jnp
from jax.experimental import pallas as pl
from jax.experimental.pallas import tpu as pltpu


def _expansion_matrix(W: int, s: int, F: int, dtype) -> jnp.ndarray:
    """One-hot expansion matrix E of shape (F*W, F*s*W*s).

    E[f*W + w, f*(s*W*s) + i*(W*s) + w*s + j] = 1  for i, j in [0, s).
    Multiplying a folded input row (F consecutive H-rows) by E produces the
    corresponding F*s contiguous output rows, flattened.
    """
    eye_w = np.eye(W, dtype=np.float32)
    # e1[w, i*(W*s) + w'*s + j] = (w == w')
    e1 = np.broadcast_to(eye_w[:, None, :, None], (W, s, W, s)).reshape(W, s * W * s)
    e2 = np.kron(np.eye(F, dtype=np.float32), e1)  # block-diagonal over the fold
    return jnp.asarray(e2, dtype=dtype)


def _choose_fold(H: int, W: int, s: int, k_cap: int = 128) -> int:
    """Pick the fold F (a divisor of H): F H-rows become one matmul row.

    Preferences (most important first):
      1. K = F*W under the FLOP cap (one-hot matmul stays memory-bound),
      2. lane-dense output rows (N_out = F*s*W*s multiple of 128),
      3. reasonably wide output rows (>= 512 lanes),
      4. K as close to the cap as possible (input lane density / MXU K fill).
    """
    def score(f):
        k = f * W
        n = k * s * s
        flop_ok = k <= k_cap
        lane_dense = (n % 128) == 0
        return (flop_ok and lane_dense, flop_ok, lane_dense, min(n, 512), -abs(k - k_cap))

    best_f, best_score = 1, None
    for f in range(1, H + 1):
        if H % f:
            continue
        sc = score(f)
        if best_score is None or sc > best_score:
            best_f, best_score = f, sc
    return best_f


def _default_tile_bytes() -> int:
    """Combined (input + output) bytes per grid step.

    ~4 MiB stays comfortably under v7x's 32 MiB default scoped-VMEM limit even
    double-buffered; on 128 MiB-VMEM parts (v5e/v6e) use ~8 MiB to push DMA
    efficiency higher.
    """
    try:
        vmem = pltpu.get_tpu_info().vmem_capacity_bytes
    except Exception:
        return 4 << 20
    return (8 << 20) if vmem > (64 << 20) else (4 << 20)


def _choose_row_tile(M: int, per_row_bytes: int, target_bytes: int,
                     sublane: int, min_steps: int) -> int:
    """Fixed sublane-aligned row tile; grid = cdiv(M, R) masks the ragged tail."""
    if M <= sublane:
        return M  # full second-minor extent -> always a legal block shape
    cap_bytes = max(sublane, (target_bytes // max(per_row_bytes, 1)) // sublane * sublane)
    cap_depth = max(sublane, (M // min_steps) // sublane * sublane)   # keep >= min_steps steps
    r = min(cap_bytes, cap_depth, (M // sublane) * sublane)
    return max(r, sublane)


def _unpool_kernel(e_ref, x_ref, o_ref):
    # x_ref: (R, K), e_ref: (K, N_out), o_ref: (R, N_out)
    acc = jnp.dot(
        x_ref[...].astype(e_ref.dtype),
        e_ref[...],
        preferred_element_type=jnp.float32,
    )
    o_ref[...] = acc.astype(o_ref.dtype)


def fixed_unpool(x: jnp.ndarray, scale_factor: int = 2, *,
                 target_tile_bytes: int | None = None,
                 min_grid_steps: int = 8) -> jnp.ndarray:
    """Pallas implementation of FixedUnpool.forward.

    Args:
      x: (B, C, H, W) array (NCHW).
      scale_factor: integer upsampling factor.

    Returns:
      (B, C, H*scale_factor, W*scale_factor) array, same dtype as x.
    """
    B, C, H, W = x.shape
    s = int(scale_factor)
    if s == 1:
        return x

    itemsize = jnp.dtype(x.dtype).itemsize
    compute_dtype = x.dtype if jnp.issubdtype(x.dtype, jnp.floating) else jnp.float32
    # TODO(synk): integer inputs are exact only for |x| < 2**24 through the f32
    # one-hot matmul; an int8 MXU path (v5e/v6e) or pure data movement would be
    # needed beyond that range (v7x MXU has no integer mode).

    if target_tile_bytes is None:
        target_tile_bytes = _default_tile_bytes()

    F = _choose_fold(H, W, s)          # fold F H-rows per matmul row
    M = (B * C * H) // F               # matmul rows
    K = F * W                          # contraction depth
    N_out = K * s * s                  # lane-dense output row width

    sublane = max(8, 32 // itemsize)   # f32: 8, bf16: 16, int8: 32
    per_row_bytes = (K + N_out) * itemsize
    R = _choose_row_tile(M, per_row_bytes, target_tile_bytes, sublane, min_grid_steps)
    grid = (pl.cdiv(M, R),)            # ragged last block is masked by Pallas

    e = _expansion_matrix(W, s, F, compute_dtype)
    x2 = x.reshape(M, K)               # free row-major reshape

    e_bytes = e.size * jnp.dtype(compute_dtype).itemsize
    est_vmem = 2 * R * per_row_bytes + e_bytes       # 2x (x+out) tiles + single E
    vmem_limit = int(min(max(2 * est_vmem, 32 << 20), 64 << 20))

    out2 = pl.pallas_call(
        _unpool_kernel,
        out_shape=jax.ShapeDtypeStruct((M, N_out), x.dtype),
        grid_spec=pltpu.PrefetchScalarGridSpec(
            num_scalar_prefetch=0,
            grid=grid,
            in_specs=[
                # E: VMEM-resident, constant block index, single-buffered.
                pl.BlockSpec((K, N_out), lambda i: (0, 0),
                             pipeline_mode=pl.Buffered(1)),
                pl.BlockSpec((R, K), lambda i: (i, 0)),
            ],
            out_specs=pl.BlockSpec((R, N_out), lambda i: (i, 0)),
        ),
        compiler_params=pltpu.CompilerParams(
            dimension_semantics=("parallel",),
            vmem_limit_bytes=vmem_limit,
        ),
        cost_estimate=pl.CostEstimate(
            flops=2 * M * K * N_out,
            transcendentals=0,
            bytes_accessed=(1 + s * s) * x.size * itemsize + e_bytes,
        ),
    )(e, x2)

    # Free row-major reshape of the contiguous output back to NCHW.
    return out2.reshape(B, C, H * s, W * s)


if __name__ == "__main__":
    key = jax.random.PRNGKey(0)
    B, C, H, W = 2, 4, 16, 16
    scale_factor = 2

    x = jax.random.normal(key, (B, C, H, W), dtype=jnp.float32)
    out = jax.block_until_ready(fixed_unpool(x, scale_factor=scale_factor))
    ref = jnp.repeat(jnp.repeat(x, scale_factor, axis=2), scale_factor, axis=3)
    assert out.shape == (B, C, H * scale_factor, W * scale_factor), out.shape
    assert out.dtype == x.dtype
    assert jnp.allclose(out, ref), "mismatch with reference (f32, s=2)"

    # Ragged cdiv grid (M=12, R=8 -> masked tail block), s=3, F=2 fold path.
    x2 = jax.random.normal(jax.random.PRNGKey(1), (1, 3, 8, 64), dtype=jnp.float32)
    out2 = jax.block_until_ready(fixed_unpool(x2, scale_factor=3))
    ref2 = jnp.repeat(jnp.repeat(x2, 3, axis=2), 3, axis=3)
    assert jnp.allclose(out2, ref2), "mismatch with reference (f32, s=3, ragged grid)"

    # bf16 path (sublane packing 16; exact through the one-hot matmul).
    xb = x.astype(jnp.bfloat16)
    outb = jax.block_until_ready(fixed_unpool(xb, scale_factor=scale_factor))
    refb = jnp.repeat(jnp.repeat(xb, scale_factor, axis=2), scale_factor, axis=3)
    assert outb.dtype == jnp.bfloat16
    assert jnp.allclose(outb.astype(jnp.float32), refb.astype(jnp.float32)), \
        "mismatch with reference (bf16, s=2)"

    print("KERNEL_OK")
</pallas_src>

<mosaic_0001>
module attributes {stable_mosaic.version = 11 : i64} {
  func.func @_unpool_kernel(%arg0: i32, %arg1: memref<128x512xf32, #tpu.memory_space<vmem>>, %arg2: memref<8x128xf32, #tpu.memory_space<vmem>>, %arg3: memref<8x512xf32, #tpu.memory_space<vmem>>) attributes {dimension_semantics = [#tpu.dimension_semantics<parallel>], iteration_bounds = array<i64: 2>, scalar_prefetch = 0 : i64, scratch_operands = 0 : i64, tpu.core_type = #tpu.core_type<tc>, window_params = [{pipeline_mode = #tpu.pipeline_mode<synchronous>, transform_indices = @transform_0, window_bounds = array<i64: 128, 512>}, {transform_indices = @transform_1, window_bounds = array<i64: 8, 128>}, {transform_indices = @transform_2, window_bounds = array<i64: 8, 512>}]} {
    %c0 = arith.constant 0 : index
    %c0_0 = arith.constant 0 : index
    %0 = vector.load %arg2[%c0, %c0_0] : memref<8x128xf32, #tpu.memory_space<vmem>>, vector<8x128xf32>
    %c0_1 = arith.constant 0 : index
    %c0_2 = arith.constant 0 : index
    %1 = vector.load %arg1[%c0_1, %c0_2] : memref<128x512xf32, #tpu.memory_space<vmem>>, vector<128x512xf32>
    %cst = arith.constant dense<0.000000e+00> : vector<8x512xf32>
    %2 = tpu.matmul %0, %1, %cst {dimension_numbers = #tpu.dot_dimension_numbers<[1], [0], [0], [1], [0, 0, 1, 1], [], []>} : vector<8x128xf32>, vector<128x512xf32>, vector<8x512xf32> -> vector<8x512xf32>
    %c0_3 = arith.constant 0 : index
    %c0_4 = arith.constant 0 : index
    %3 = vector.load %arg3[%c0_3, %c0_4] : memref<8x512xf32, #tpu.memory_space<vmem>>, vector<8x512xf32>
    tpu.vector_store %arg3[%c0_3, %c0_4], %2 {strides = array<i32>} : memref<8x512xf32, #tpu.memory_space<vmem>>, vector<8x512xf32>,
    return
  }
  func.func @transform_0(%arg0: i32) -> (i32, i32) {
    %c0_i32 = arith.constant 0 : i32
    %c0_i32_0 = arith.constant 0 : i32
    %c0_i32_1 = arith.constant 0 : i32
    return %c0_i32, %c0_i32_0 : i32, i32
  }
  func.func @transform_1(%arg0: i32) -> (i32, i32) {
    %c0_i32 = arith.constant 0 : i32
    %c0_i32_0 = arith.constant 0 : i32
    return %arg0, %c0_i32 : i32, i32
  }
  func.func @transform_2(%arg0: i32) -> (i32, i32) {
    %c0_i32 = arith.constant 0 : i32
    %c0_i32_0 = arith.constant 0 : i32
    return %arg0, %c0_i32 : i32, i32
  }
}

</mosaic_0001>

<bundles_post_ra>
// kernel: tpu_custom_call.1
= control target key start
LH: loop header
LB: loop body
LE: loop exit
PB: predicated region body
PF: predicated region fallthrough
CT: control target
= control target key end

     0   :  { %7 = vsyncpa [#allocation3], 0  ;;  %s873_s0 = inlined_call_operand.hbm [shape: f32[128,512], index: 0, kind: input, shape index: {}]   ;;  %s874_s1 = inlined_call_operand.hbm [shape: f32[16,128], index: 1, kind: input, shape index: {}]   ;;  %s875_s2 = inlined_call_operand.hbm [shape: f32[16,512], index: 2, kind: output, shape index: {}]  }
   0x1   :  { %8 = vsyncpa [#allocation6], 0 }
   0x2   :  { %10 = vsyncpa [#allocation6 + $0x1], 0 }
   0x3   :  { %11 = vsyncpa [#allocation4], 0 }
   0x4   :  { %13 = vsyncpa [#allocation4 + $0x1], 0  ;;  %s703_s9 = smov 0   ;;  %s705_s10 = smov 0  }
   0x5   :  { %s707_s11 = smov 0   ;;  %s709_s12 = smov 0  }
   0x6 LB: > { %s724_s13 = sadd.s32 4294967295, %s680_s12   ;;  %s482_s14 = sadd.s32 4294967294, %s680_s12   ;;  %s680_s12 = sphi %s709_s12, %s897_s12   ;;  %s676_s11 = sphi %s707_s11, %s896_s11   ;;  %s672_s10 = sphi %s705_s10, %s895_s10   ;;  %s668_s9 = sphi %s703_s9, %s894_s9  }
   0x7   : > { %p60_p0 = scmp.ne.s32.totalorder %s672_s10, %s668_s9  ;;  %p876_p1 = scmp.eq.s32.totalorder %s724_s13, 0 }
   0x8   : > { %p90_p3 = scmp.eq.s32.totalorder %s482_s14, 1  ;;  %p483_p5 = scmp.ge.s32.totalorder %s680_s12, 1 }
   0x9   : > { %p733_p4 = por %p876_p1, %p60_p0  ;;  %p97_p7 = scmp.lt.s32.totalorder %s680_s12, 3 }
   0xa   : > { %p738_p6 = por %p90_p3, %p60_p0  ;;  %s682_s18 = smov [#allocation2]  }
   0xb   : > { %s880_s15 = scalar_select %p733_p4, 1, 0 }
   0xc   : > { %s881_s16 = scalar_select %p738_p6, 1, 0 }
   0xd   : > { %p743_p8 = pnand %p483_p5, %p97_p7  ;;  %s109_s19 = sshll.u32 %s682_s18, 4  ;;  %s110_s19 = int_to_ptr.vmem [resolvable:$true] %s109_s19 }
   0xe   : > { %s757_s21 = sadd.s32 1, %s680_s12   ;;  %s47_s22 = sadd.s32 1, %s676_s11 }
   0xf   : > { %s882_s17 = scalar_select %p743_p8, 1, 0 }
  0x10   : > { %p506_p9 = pneg %p743_p8  ;;  %s44_s23 = ssub.s32 %s680_s12, %s757_s21 }
  0x11   : > { %s569_s24 = scalar_lea.vmem %s110_s19, 8192  ;;  %p577_p5 = scmp.lt.s32.totalorder %s110_s19, %s110_s19 }
  0x12   : > { %p752_p11 = pnand %p506_p9, %p876_p1  ;;  %p570_p13 = scmp.ne.s32.totalorder %s110_s19, %s569_s24 }
  0x13   : > { %p578_p7 = scmp.lt.s32.totalorder %s569_s24, %s569_s24 }
  0x14   : > { %p560_p12 = pneg %p752_p11 }
  0x15   : > { %p579_p10 = por %p578_p7, %p577_p5 }
  0x16   : > { %p572_p0 = pnand %p570_p13, %p560_p12 }
  0x18   : > { %p573_p3 = pneg %p572_p0 }
  0x1a   : > { %p580_p2 = pnand %p579_p10, %p573_p3 }
  0x1c   : > { %583 = shalt.err (!%p580_p2)
}
  0x1d   : > { %s683_s25 = smov 512   ;;  %s684_s26 = smov 32  }
  0x1e   : > { %509 = dma.hbm_to_vmem [thread:$0]  (!%p752_p11), %s873_s0, 8192, %s110_s19, [#allocation3], %s683_s25, %s683_s25, %s684_s26  }
  0x1f   : > { %p45_p9 = scmp.eq.s32.totalorder %s44_s23, 0  ;;  %p54_p12 = scmp.ne.s32.totalorder %s676_s11, %s672_s10 }
  0x20   : > { %p55_p10 = scmp.eq.s32.totalorder %s680_s12, 0  ;;  %p519_p2 = scmp.lt.s32.totalorder %s680_s12, 2 }
  0x21   : > { %s774_s29 = scalar_select %p45_p9, %s676_s11, %s47_s22  }
  0x22   : > { %p56_p13 = por %p55_p10, %p54_p12  ;;  %p884_p0 = scmp.eq.s32.totalorder %s724_s13, 1 }
  0x23   : > { %s123_s3 = sand.u32 1, %s676_s11   ;;  %s487_s4 = sshll.u32 %s680_s12, 7 }
  0x24   : > { %p778_p3 = por %p884_p0, %p54_p12  ;;  %s486_s5 = sshll.u32 %s123_s3, 3 }
  0x25   : > { %s787_s8 = scalar_lea.hbm %s874_s1, %s487_s4  ;;  %s127_s14 = scalar_lea.vmem [#allocation5], %s486_s5 }
  0x26   : > { %s885_s30 = scalar_select %p778_p3, 1, 0 }
  0x27   : > { %s134_s18 = sshll.u32 %s127_s14, 4  ;;  %p789_p11 = pnand %p519_p2, %p56_p13  ;;  %s135_s18 = int_to_ptr.vmem [resolvable:$true] %s134_s18 }
  0x28   : > { %s124_s20 = scalar_lea.sflag [#allocation6], %s123_s3  ;;  %s584_s22 = scalar_lea.hbm %s787_s8, 128 }
  0x29   : > { %p585_p5 = scmp.ne.s32.totalorder %s787_s8, %s584_s22  ;;  %p586_p7 = pneg %p789_p11 }
  0x2a   : > { %s589_s25 = scalar_lea.hbm %s874_s1, 256  ;;  %p590_p10 = scmp.lt.s32.totalorder %s787_s8, %s874_s1 }
  0x2b   : > { %p587_p9 = pnand %p586_p7, %p585_p5  ;;  %p591_p2 = scmp.lt.s32.totalorder %s589_s25, %s584_s22 }
  0x2d   : > { %p588_p12 = pneg %p587_p9  ;;  %p592_p13 = por %p591_p2, %p590_p10 }
  0x2f   : > { %p593_p0 = pnand %p592_p13, %p588_p12 }
  0x31   : > { %596 = shalt.err (!%p593_p0)
}
  0x32   : > { %s597_s28 = scalar_lea.vmem %s135_s18, 128  ;;  %s685_s3 = smov [#allocation5]  }
  0x33   : > { %p598_p1 = scmp.ne.s32.totalorder %s135_s18, %s597_s28  ;;  %s602_s4 = sshll.u32 %s685_s3, 4  ;;  %s603_s4 = int_to_ptr.vmem [resolvable:$false] %s602_s4 }
  0x34   : > { %s604_s5 = scalar_lea.vmem %s603_s4, 256  ;;  %p605_p5 = scmp.lt.s32.totalorder %s135_s18, %s603_s4 }
  0x35   : > { %p600_p6 = pnand %p598_p1, %p586_p7  ;;  %p606_p9 = scmp.lt.s32.totalorder %s604_s5, %s597_s28 }
  0x37   : > { %p601_p3 = pneg %p600_p6  ;;  %p607_p4 = por %p606_p9, %p605_p5 }
  0x39   : > { %p608_p8 = pnand %p607_p4, %p601_p3 }
  0x3b   : > { %611 = shalt.err (!%p608_p8)
}
  0x3c   : > { %513 = dma.hbm_to_vmem [thread:$0]  (!%p789_p11), %s787_s8, 128, %s135_s18, %s124_s20  }
  0x3d   : > { %p887_p12 = scmp.ne.s32.totalorder %s882_s17, 0 }
  0x3e   : > { %p888_p10 = scmp.eq.s32.totalorder (!%p887_p12), %s724_s13, 0 }
  0x3f   : > { %143 = sbr.rel (%p887_p12) target bundleno = 315 (0x13b), region = 28 }
  0x44   : > { %655 = dma.done.wait (%p888_p10), [#allocation3], 8192   ;;  %p889_p1 = pmov %p888_p10 }
  0x45   : > { %s814_s6 = sand.u32 1, %s672_s10   ;;  %p890_p4 = scmp.ne.s32.totalorder %s880_s15, 0 }
  0x46   : > { %657 = vsyncadd (%p889_p1), [#allocation3], 4294959104  ;;  %s490_s7 = sshll.u32 %s814_s6, 3  ;;  %s150_s14 = scalar_lea.sflag [#allocation6], %s814_s6 }
  0x47   : > { %s818_s19 = scalar_lea.vmem [#allocation5], %s490_s7 }
  0x48   : > { %659 = dma.done.wait (%p890_p4), %s150_s14, 128  }
  0x49   : > { %661 = vsyncadd (%p890_p4), %s150_s14, 4294967168  ;;  %v686_v0 = vmov 0.0   ;;  %v236_v1 = vld [vmem:[#allocation2 + $0x1e8] sm:$0xff]  ;;  %v238_v2 = vld [vmem:[#allocation2 + $0x1f8] sm:$0xff]  ;;  %s491_s15 = sshll.u32 %s814_s6, 5  ;;  %s497_s18 = sshll.u32 %s724_s13, 9 }
  0x4a   : > { %303 = vmatprep.mubr.f32.mxu0 %v686_v0  ;;  %374 = vmatprep.mubr.f32.mxu1 %v686_v0  ;;  %v235_v3 = vld [vmem:[#allocation2 + $0x1e0] sm:$0xff]  ;;  %v237_v4 = vld [vmem:[#allocation2 + $0x1f0] sm:$0xff]  ;;  %v232_v5 = vld [vmem:[#allocation2 + $0x1c8] sm:$0xff]  ;;  %s173_s17 = scalar_lea.vmem [#allocation7], %s491_s15  ;;  %s832_s23 = scalar_lea.hbm %s875_s2, %s497_s18 }
  0x4b   : > { %239 = vmatprep.subr.mxu0 %v236_v1  ;;  %310 = vmatprep.subr.mxu1 %v238_v2  ;;  %v234_v6 = vld [vmem:[#allocation2 + $0x1d8] sm:$0xff]  ;;  %v231_v7 = vld [vmem:[#allocation2 + $0x1c0] sm:$0xff]  ;;  %v233_v8 = vld [vmem:[#allocation2 + $0x1d0] sm:$0xff]  ;;  %s400_s8 = sshll.u32 %s173_s17, 4  ;;  %s386_s24 = scalar_lea.sflag [#allocation4], %s814_s6  ;;  %s827_s8 = int_to_ptr.vmem [resolvable:$true] %s400_s8 }
  0x4c   : > { %240 = vmatpush1.msra.mxu0 %v235_v3  ;;  %311 = vmatpush1.msra.mxu1 %v237_v4  ;;  %v228_v9 = vld [vmem:[#allocation2 + $0x1a8] sm:$0xff]  ;;  %v230_v10 = vld [vmem:[#allocation2 + $0x1b8] sm:$0xff]  ;;  %v227_v11 = vld [vmem:[#allocation2 + $0x1a0] sm:$0xff]  ;;  %s612_s13 = scalar_lea.vmem %s827_s8, 512  ;;  %p891_p8 = scmp.ne.s32.totalorder %s885_s30, 0 }
  0x4d   : > { %241 = vmatprep.subr.mxu0 %v232_v5  ;;  %312 = vmatprep.subr.mxu1 %v234_v6  ;;  %v229_v12 = vld [vmem:[#allocation2 + $0x1b0] sm:$0xff]  ;;  %v224_v13 = vld [vmem:[#allocation2 + $0x188] sm:$0xff]  ;;  %v226_v14 = vld [vmem:[#allocation2 + $0x198] sm:$0xff]  ;;  %p613_p6 = scmp.ne.s32.totalorder %s827_s8, %s612_s13  ;;  %s687_s25 = smov [#allocation7]  }
  0x4e   : > { %242 = vmatpush1.msra.mxu0 %v231_v7  ;;  %313 = vmatpush1.msra.mxu1 %v233_v8  ;;  %v223_v15 = vld [vmem:[#allocation2 + $0x180] sm:$0xff]  ;;  %v225_v16 = vld [vmem:[#allocation2 + $0x190] sm:$0xff]  ;;  %v220_v17 = vld [vmem:[#allocation2 + $0x168] sm:$0xff]  ;;  %s616_s26 = sshll.u32 %s687_s25, 4  ;;  %s617_s26 = int_to_ptr.vmem [resolvable:$false] %s616_s26 }
  0x4f   : > { %243 = vmatprep.subr.mxu0 %v228_v9  ;;  %314 = vmatprep.subr.mxu1 %v230_v10  ;;  %v222_v18 = vld [vmem:[#allocation2 + $0x178] sm:$0xff]  ;;  %v219_v19 = vld [vmem:[#allocation2 + $0x160] sm:$0xff]  ;;  %v221_v20 = vld [vmem:[#allocation2 + $0x170] sm:$0xff]  ;;  %p614_p3 = pnand %p613_p6, %p891_p8  ;;  %s618_s27 = scalar_lea.vmem %s617_s26, 1024 }
  0x50   : > { %244 = vmatpush1.msra.mxu0 %v227_v11  ;;  %315 = vmatpush1.msra.mxu1 %v229_v12  ;;  %v216_v21 = vld [vmem:[#allocation2 + $0x148] sm:$0xff]  ;;  %v218_v22 = vld [vmem:[#allocation2 + $0x158] sm:$0xff]  ;;  %v215_v23 = vld [vmem:[#allocation2 + $0x140] sm:$0xff]  ;;  %p619_p7 = scmp.lt.s32.totalorder %s827_s8, %s617_s26  ;;  %p620_p2 = scmp.lt.s32.totalorder %s618_s27, %s612_s13 }
  0x51   : > { %245 = vmatprep.subr.mxu0 %v224_v13  ;;  %316 = vmatprep.subr.mxu1 %v226_v14  ;;  %v217_v24 = vld [vmem:[#allocation2 + $0x150] sm:$0xff]  ;;  %v212_v25 = vld [vmem:[#allocation2 + $0x128] sm:$0xff]  ;;  %v214_v26 = vld [vmem:[#allocation2 + $0x138] sm:$0xff]  ;;  %p615_p11 = pneg %p614_p3 }
  0x52   : > { %246 = vmatpush1.msra.mxu0 %v223_v15  ;;  %317 = vmatpush1.msra.mxu1 %v225_v16  ;;  %v211_v27 = vld [vmem:[#allocation2 + $0x120] sm:$0xff]  ;;  %v213_v28 = vld [vmem:[#allocation2 + $0x130] sm:$0xff]  ;;  %v208_v29 = vld [vmem:[#allocation2 + $0x108] sm:$0xff]  ;;  %p621_p13 = por %p620_p2, %p619_p7 }
  0x53   : > { %247 = vmatprep.subr.mxu0 %v220_v17  ;;  %318 = vmatprep.subr.mxu1 %v222_v18  ;;  %v210_v30 = vld [vmem:[#allocation2 + $0x118] sm:$0xff]  ;;  %v207_v31 = vld [vmem:[#allocation2 + $0x100] sm:$0xff]  ;;  %v209_v32 = vld [vmem:[#allocation2 + $0x110] sm:$0xff] }
  0x54   : > { %248 = vmatpush1.msra.mxu0 %v219_v19  ;;  %319 = vmatpush1.msra.mxu1 %v221_v20  ;;  %v204_v33 = vld [vmem:[#allocation2 + $0xe8] sm:$0xff]  ;;  %v206_v34 = vld [vmem:[#allocation2 + $0xf8] sm:$0xff]  ;;  %v203_v35 = vld [vmem:[#allocation2 + $0xe0] sm:$0xff]  ;;  %p622_p0 = pnand %p621_p13, %p615_p11 }
  0x55   : > { %249 = vmatprep.subr.mxu0 %v216_v21  ;;  %320 = vmatprep.subr.mxu1 %v218_v22  ;;  %v205_v36 = vld [vmem:[#allocation2 + $0xf0] sm:$0xff]  ;;  %v200_v37 = vld [vmem:[#allocation2 + $0xc8] sm:$0xff]  ;;  %v202_v38 = vld [vmem:[#allocation2 + $0xd8] sm:$0xff] }
  0x56   : > { %250 = vmatpush1.msra.mxu0 %v215_v23  ;;  %321 = vmatpush1.msra.mxu1 %v217_v24  ;;  %v199_v39 = vld [vmem:[#allocation2 + $0xc0] sm:$0xff]  ;;  %v201_v40 = vld [vmem:[#allocation2 + $0xd0] sm:$0xff]  ;;  %v196_v41 = vld [vmem:[#allocation2 + $0xa8] sm:$0xff] }
  0x57   : > { %251 = vmatprep.subr.mxu0 %v212_v25  ;;  %322 = vmatprep.subr.mxu1 %v214_v26  ;;  %v198_v42 = vld [vmem:[#allocation2 + $0xb8] sm:$0xff]  ;;  %v195_v43 = vld [vmem:[#allocation2 + $0xa0] sm:$0xff]  ;;  %v197_v44 = vld [vmem:[#allocation2 + $0xb0] sm:$0xff] }
  0x58   : > { %252 = vmatpush1.msra.mxu0 %v211_v27  ;;  %323 = vmatpush1.msra.mxu1 %v213_v28  ;;  %v192_v45 = vld [vmem:[#allocation2 + $0x88] sm:$0xff]  ;;  %v194_v46 = vld [vmem:[#allocation2 + $0x98] sm:$0xff]  ;;  %v191_v47 = vld [vmem:[#allocation2 + $0x80] sm:$0xff] }
  0x59   : > { %253 = vmatprep.subr.mxu0 %v208_v29  ;;  %324 = vmatprep.subr.mxu1 %v210_v30  ;;  %v193_v48 = vld [vmem:[#allocation2 + $0x90] sm:$0xff]  ;;  %v188_v49 = vld [vmem:[#allocation2 + $0x68] sm:$0xff]  ;;  %v190_v50 = vld [vmem:[#allocation2 + $0x78] sm:$0xff] }
  0x5a   : > { %254 = vmatpush1.msra.mxu0 %v207_v31  ;;  %325 = vmatpush1.msra.mxu1 %v209_v32  ;;  %v187_v51 = vld [vmem:[#allocation2 + $0x60] sm:$0xff]  ;;  %v189_v52 = vld [vmem:[#allocation2 + $0x70] sm:$0xff]  ;;  %v184_v53 = vld [vmem:[#allocation2 + $0x48] sm:$0xff] }
  0x5b   : > { %255 = vmatprep.subr.mxu0 %v204_v33  ;;  %326 = vmatprep.subr.mxu1 %v206_v34  ;;  %v186_v54 = vld [vmem:[#allocation2 + $0x58] sm:$0xff]  ;;  %v183_v55 = vld [vmem:[#allocation2 + $0x40] sm:$0xff]  ;;  %v185_v56 = vld [vmem:[#allocation2 + $0x50] sm:$0xff] }
  0x5c   : > { %256 = vmatpush1.msra.mxu0 %v203_v35  ;;  %327 = vmatpush1.msra.mxu1 %v205_v36  ;;  %v180_v57 = vld [vmem:[#allocation2 + $0x28] sm:$0xff]  ;;  %v182_v58 = vld [vmem:[#allocation2 + $0x38] sm:$0xff]  ;;  %v179_v59 = vld [vmem:[#allocation2 + $0x20] sm:$0xff] }
  0x5d   : > { %257 = vmatprep.subr.mxu0 %v200_v37  ;;  %328 = vmatprep.subr.mxu1 %v202_v38  ;;  %v181_v60 = vld [vmem:[#allocation2 + $0x30] sm:$0xff]  ;;  %v176_v61 = vld [vmem:[#allocation2 + $0x8] sm:$0xff]  ;;  %v178_v62 = vld [vmem:[#allocation2 + $0x18] sm:$0xff] }
  0x5e   : > { %258 = vmatpush1.msra.mxu0 %v199_v39  ;;  %329 = vmatpush1.msra.mxu1 %v201_v40  ;;  %v175_v63 = vld [vmem:[#allocation2] sm:$0xff]  ;;  %v177_v0 = vld [vmem:[#allocation2 + $0x10] sm:$0xff] }
  0x5f   : > { %259 = vmatprep.subr.mxu0 %v196_v41  ;;  %330 = vmatprep.subr.mxu1 %v198_v42  ;;  %v174_v1 = vld [vmem:[%s818_s19] sm:$0xff] }
  0x60   : > { %260 = vmatpush1.msra.mxu0 %v195_v43  ;;  %331 = vmatpush1.msra.mxu1 %v197_v44 }
  0x61   : > { %261 = vmatprep.subr.mxu0 %v192_v45  ;;  %332 = vmatprep.subr.mxu1 %v194_v46 }
  0x62   : > { %262 = vmatpush1.msra.mxu0 %v191_v47  ;;  %333 = vmatpush1.msra.mxu1 %v193_v48 }
  0x63   : > { %263 = vmatprep.subr.mxu0 %v188_v49  ;;  %334 = vmatprep.subr.mxu1 %v190_v50 }
  0x64   : > { %264 = vmatpush1.msra.mxu0 %v187_v51  ;;  %335 = vmatpush1.msra.mxu1 %v189_v52 }
  0x65   : > { %265 = vmatprep.subr.mxu0 %v184_v53  ;;  %336 = vmatprep.subr.mxu1 %v186_v54 }
  0x66   : > { %266 = vmatpush1.msra.mxu0 %v183_v55  ;;  %337 = vmatpush1.msra.mxu1 %v185_v56 }
  0x67   : > { %267 = vmatprep.subr.mxu0 %v180_v57  ;;  %338 = vmatprep.subr.mxu1 %v182_v58 }
  0x68   : > { %268 = vmatpush1.msra.mxu0 %v179_v59  ;;  %339 = vmatpush1.msra.mxu1 %v181_v60 }
  0x69   : > { %269 = vmatprep.subr.mxu0 %v176_v61  ;;  %340 = vmatprep.subr.mxu1 %v178_v62 }
  0x6a   : > { %270 = vmatpush1.msra.mxu0 %v175_v63  ;;  %341 = vmatpush1.msra.mxu1 %v177_v0 }
  0x6b   : > { %304 = vmatmul.mubr.f32.vlgmr.msra.gmra.mxu0 %v174_v1  ;;  %375 = vmatmul.mubr.f32.vlgmr.msra.gmra.mxu1 %v174_v1 }
 0x12b   : > { %v305_v2 = vpop.f32.mrf.mxu0  ;;  %v376_v3 = vpop.f32.mrf.mxu1 }
 0x12c   : > { %381 = vst [vmem:[%s173_s17] sm:$0xff] %v305_v2  ;;  %383 = vst [vmem:[%s173_s17 + $0x10] sm:$0xff] %v376_v3 }
 0x12d   : > { %v307_v4 = vpop.f32.mrf.mxu0  ;;  %v378_v5 = vpop.f32.mrf.mxu1 }
 0x12e   : > { %382 = vst [vmem:[%s173_s17 + $0x8] sm:$0xff] %v307_v4  ;;  %384 = vst [vmem:[%s173_s17 + $0x18] sm:$0xff] %v378_v5 }
 0x12f   : > { %625 = shalt.err (!%p622_p0)
}
 0x130   : > { %s626_s28 = scalar_lea.hbm %s832_s23, 512  ;;  %s630_s5 = scalar_lea.hbm %s875_s2, 1024 }
 0x131   : > { %p627_p5 = scmp.ne.s32.totalorder %s832_s23, %s626_s28  ;;  %p631_p10 = scmp.lt.s32.totalorder %s832_s23, %s875_s2 }
 0x132   : > { %p632_p1 = scmp.lt.s32.totalorder %s630_s5, %s626_s28 }
 0x133   : > { %p628_p9 = pnand %p627_p5, %p891_p8 }
 0x134   : > { %p633_p4 = por %p632_p1, %p631_p10 }
 0x135   : > { %p629_p12 = pneg %p628_p9 }
 0x137   : > { %p634_p6 = pnand %p633_p4, %p629_p12 }
 0x139   : > { %637 = shalt.err (!%p634_p6)
}
 0x13a   : > { %504 = dma.vmem_to_hbm [thread:$0]  (%p891_p8), %s827_s8, 512, %s832_s23, %s386_s24  }
 0x13b PF: > { %s412_s14 = sand.u32 1, %s668_s9   ;;  %p892_p3 = scmp.ne.s32.totalorder %s881_s16, 0 }
 0x13c   : > { %p893_p11 = scmp.ge.s32.totalorder %s680_s12, 2  ;;  %s413_s19 = scalar_lea.sflag [#allocation4], %s412_s14 }
 0x13e   : > { %p515_p7 = pnand %p893_p11, %p892_p3 }
 0x140   : > { %p516_p2 = pneg %p515_p7 }
 0x142   : > { %663 = dma.done.wait (%p516_p2), %s413_s19, 512  }
 0x143   : > { %665 = vsyncadd (%p516_p2), %s413_s19, 4294966784  ;;  %p16_p13 = scmp.ge.s32.totalorder %s757_s21, 4   ;;  %s894_s9 = smov %s672_s10 }
 0x144   : > { %s895_s10 = smov %s676_s11  ;;  %s896_s11 = smov %s774_s29 }
 0x145   : > { %s897_s12 = smov %s757_s21  ;;  %18 = sbr.rel (!%p16_p13) target bundleno = 6 (0x6), region = 78 }
 0x14a   :  { %418 = vsyncpa [#allocation3], 1 }
 0x14b   :  { %420 = vsyncpa [#allocation3 + $0x1], 1 }
 0x14c   :  { %421 = vsyncpa [#allocation6], 1 }
 0x14d   :  { %423 = vsyncpa [#allocation6 + $0x1], 1 }
 0x14e   :  { %424 = vsyncpa [#allocation4], 1 }
 0x14f   :  { %426 = vsyncpa [#allocation4 + $0x1], 1 }

</bundles_post_ra>
